<compile_context>
chip_gen: v7x
topology: tpu7x:2x2x1
jax: 0.10.0
libtpu: 0.0.40
codegen_flags: <defaults>
</compile_context>

<pallas_src>
import functools

import jax
import jax.numpy as jnp
import numpy as np
from jax import lax
from jax.experimental import pallas as pl
from jax.experimental.pallas import tpu as pltpu

BN_EPS = 1e-5


def _prelu(v, a):
    return jnp.where(v >= 0.0, v, a * v)


def _bottleneck_kernel(alpha_ref, x_ref,
                       w1_ref, t1_ref,
                       w2_ref, t2_ref,
                       w3_ref, t3_ref,
                       out_ref, *, H, W):
    HW = H * W
    x = x_ref[0]                       # (Cin, HW) f32: channels on sublanes, spatial on lanes

    a1 = alpha_ref[0]
    a2 = alpha_ref[1]
    a3 = alpha_ref[2]
    a4 = alpha_ref[3]

    # ---- ext branch 1: 1x1 conv (BN scale folded into w1) -> shift -> PReLU ----
    e1 = jnp.dot(w1_ref[...], x.astype(jnp.bfloat16),
                 preferred_element_type=jnp.float32)            # (Crp, HW)
    e1 = _prelu(e1 + t1_ref[...], a1)

    # ---- ext branch 2: 3x3 conv, padding=1 (BN scale folded into w2) ----
    # Build the 9 shifted taps with lane rolls (+/-1 for kx, +/-W for ky) and
    # hoisted boundary masks, stack them along sublanes (8-aligned blocks) and
    # contract all of them with one MXU matmul of K = 9*Crp.
    pos = lax.broadcasted_iota(jnp.int32, e1.shape, 1)          # flattened spatial index
    col = pos % W
    left_ok = col >= 1                  # column w-1 exists
    right_ok = col <= W - 2             # column w+1 exists
    top_ok = pos >= W                   # row h-1 exists
    bot_ok = pos < HW - W               # row h+1 exists

    taps = []
    for ky in range(3):
        for kx in range(3):
            d = (ky - 1) * W + (kx - 1)
            tap = e1 if d == 0 else pltpu.roll(e1, (-d) % HW, axis=1)
            mask = None
            if ky == 0:
                mask = top_ok
            elif ky == 2:
                mask = bot_ok
            if kx == 0:
                mask = left_ok if mask is None else (mask & left_ok)
            elif kx == 2:
                mask = right_ok if mask is None else (mask & right_ok)
            if mask is not None:
                tap = jnp.where(mask, tap, 0.0)
            taps.append(tap)
    im2col = jnp.concatenate(taps, axis=0)                      # (9*Crp, HW) f32
    e2 = jnp.dot(w2_ref[...], im2col.astype(jnp.bfloat16),
                 preferred_element_type=jnp.float32)            # (Crp, HW)
    e2 = _prelu(e2 + t2_ref[...], a2)

    # ---- ext branch 3: 1x1 conv (BN scale folded into w3) -> shift -> PReLU ----
    e3 = jnp.dot(w3_ref[...], e2.astype(jnp.bfloat16),
                 preferred_element_type=jnp.float32)            # (Cout, HW)
    e3 = _prelu(e3 + t3_ref[...], a3)

    # ---- regularizer: Dropout2d(p=0) == identity ----
    # ---- residual add + final PReLU (f32) ----
    out_ref[0] = _prelu(x + e3, a4)


def _fold_bn(gamma, beta, mean, var):
    scale = gamma / jnp.sqrt(var + BN_EPS)
    shift = beta - mean * scale
    return scale, shift


def _pad_rows(a, rows):
    out = jnp.zeros((rows,) + a.shape[1:], a.dtype)
    return out.at[: a.shape[0]].set(a)


def regular_bottleneck(x_nchw, params):
    N, Cin, H, W = x_nchw.shape
    Cr = params["w1"].shape[0]
    Cout = params["w3"].shape[0]
    HW = H * W
    # Pad the reduced depth to a sublane multiple so the 9 im2col blocks stack at
    # 8-aligned sublane offsets (zero channels are mathematically inert).
    Crp = max(8, -(-Cr // 8) * 8)

    # NCHW flattened is already the lane-dense layout we want (spatial on lanes).
    x2d = x_nchw.reshape(N, Cin, HW).astype(jnp.float32)

    s1, t1 = _fold_bn(*params["bn1"])
    s2, t2 = _fold_bn(*params["bn2"])
    s3, t3 = _fold_bn(*params["bn3"])

    # Fold BN scales into the conv weights (per output channel), pad to Crp.
    w1 = params["w1"][:, :, 0, 0] * s1[:, None]                 # (Cr, Cin)
    w3 = params["w3"][:, :, 0, 0] * s3[:, None]                 # (Cout, Cr)
    w2 = params["w2"] * s2[:, None, None, None]                 # (Cr, Cr, 3, 3)

    w1p = _pad_rows(w1, Crp)                                    # (Crp, Cin)
    w2p = jnp.zeros((Crp, Crp, 3, 3), jnp.float32).at[:Cr, :Cr].set(w2)
    # column ordering must match the kernel's tap order j = ky*3 + kx, ci fastest
    w2cat = jnp.transpose(w2p, (0, 2, 3, 1)).reshape(Crp, 9 * Crp)
    w3p = jnp.zeros((Cout, Crp), jnp.float32).at[:, :Cr].set(w3)

    t1p = _pad_rows(t1, Crp)[:, None]                           # (Crp, 1)
    t2p = _pad_rows(t2, Crp)[:, None]                           # (Crp, 1)
    t3c = t3[:, None]                                           # (Cout, 1)

    # bf16 MXU operands; all elementwise math stays f32.
    w1b = w1p.astype(jnp.bfloat16)
    w2b = w2cat.astype(jnp.bfloat16)
    w3b = w3p.astype(jnp.bfloat16)
    alphas = params["alphas"].astype(jnp.float32)

    kernel = functools.partial(_bottleneck_kernel, H=H, W=W)

    grid_spec = pltpu.PrefetchScalarGridSpec(
        num_scalar_prefetch=0,
        grid=(N,),
        in_specs=[
            pl.BlockSpec(memory_space=pltpu.MemorySpace.SMEM),   # PReLU alphas
            pl.BlockSpec((1, Cin, HW), lambda b: (b, 0, 0)),     # x (per-image slab)
            pl.BlockSpec((Crp, Cin), lambda b: (0, 0)),          # w1 (scale folded)
            pl.BlockSpec((Crp, 1), lambda b: (0, 0)),            # bn1 shift
            pl.BlockSpec((Crp, 9 * Crp), lambda b: (0, 0)),      # w2 taps (scale folded)
            pl.BlockSpec((Crp, 1), lambda b: (0, 0)),            # bn2 shift
            pl.BlockSpec((Cout, Crp), lambda b: (0, 0)),         # w3 (scale folded)
            pl.BlockSpec((Cout, 1), lambda b: (0, 0)),           # bn3 shift
        ],
        out_specs=pl.BlockSpec((1, Cout, HW), lambda b: (b, 0, 0)),
    )

    # Explicit VMEM budget derived from the per-step block sizes (review: v7x).
    blk_bytes = (Cin * HW + Cout * HW) * 4
    interm_bytes = 9 * Crp * HW * (4 + 2) + 6 * Crp * HW * 4 + 2 * Cout * HW * 4
    vmem_limit = int(min(64 * 2**20,
                         max(32 * 2**20, 2 * blk_bytes + interm_bytes + (4 << 20))))

    out2d = pl.pallas_call(
        kernel,
        out_shape=jax.ShapeDtypeStruct((N, Cout, HW), jnp.float32),
        grid_spec=grid_spec,
        compiler_params=pltpu.CompilerParams(
            dimension_semantics=("parallel",),
            vmem_limit_bytes=vmem_limit),
    )(alphas, x2d, w1b, t1p, w2b, t2p, w3b, t3c)

    return out2d.reshape(N, Cout, H, W)


def reference_forward(x, params):
    """Pure-JAX NCHW reference replicating the PyTorch forward (eval mode)."""
    def conv(y, w, pad):
        return lax.conv_general_dilated(
            y, w, window_strides=(1, 1), padding=[(pad, pad), (pad, pad)],
            dimension_numbers=("NCHW", "OIHW", "NCHW"),
            precision=lax.Precision.HIGHEST)

    def bn(y, p):
        gamma, beta, mean, var = p
        inv = gamma / jnp.sqrt(var + BN_EPS)
        return (y - mean[None, :, None, None]) * inv[None, :, None, None] \
            + beta[None, :, None, None]

    a1, a2, a3, a4 = params["alphas"]
    e = _prelu(bn(conv(x, params["w1"], 0), params["bn1"]), a1)
    e = _prelu(bn(conv(e, params["w2"], 1), params["bn2"]), a2)
    e = _prelu(bn(conv(e, params["w3"], 0), params["bn3"]), a3)
    return _prelu(x + e, a4)   # Dropout2d(p=0) is identity


if __name__ == "__main__":
    N, C, H, W = 2, 16, 16, 16        # input_ch == output_ch (residual add requires it)
    Cr = C // 4                        # projection_ratio = 4

    key = jax.random.PRNGKey(0)
    ks = jax.random.split(key, 8)

    def bn_init(k, c):
        k1, k2, k3, k4 = jax.random.split(k, 4)
        gamma = 1.0 + 0.1 * jax.random.normal(k1, (c,), jnp.float32)
        beta = 0.1 * jax.random.normal(k2, (c,), jnp.float32)
        mean = 0.1 * jax.random.normal(k3, (c,), jnp.float32)
        var = 0.5 + jnp.abs(jax.random.normal(k4, (c,), jnp.float32))
        return (gamma, beta, mean, var)

    params = {
        "w1": 0.3 * jax.random.normal(ks[0], (Cr, C, 1, 1), jnp.float32),
        "w2": 0.3 * jax.random.normal(ks[1], (Cr, Cr, 3, 3), jnp.float32),
        "w3": 0.3 * jax.random.normal(ks[2], (C, Cr, 1, 1), jnp.float32),
        "bn1": bn_init(ks[3], Cr),
        "bn2": bn_init(ks[4], Cr),
        "bn3": bn_init(ks[5], C),
        "alphas": jnp.full((4,), 0.25, jnp.float32),   # nn.PReLU() default init
    }
    x = jax.random.normal(ks[6], (N, C, H, W), jnp.float32)

    out = jax.block_until_ready(regular_bottleneck(x, params))
    ref = jax.block_until_ready(reference_forward(x, params))

    assert out.shape == (N, C, H, W)
    # Looser tolerance than a pure-f32 kernel: the three convs run with bf16 MXU
    # operands (f32 accumulation); BN/PReLU/residual math stays f32.
    np.testing.assert_allclose(np.asarray(out), np.asarray(ref),
                               atol=5e-2, rtol=5e-2)
    print("KERNEL_OK")
</pallas_src>

<mosaic_0001>
module attributes {stable_mosaic.version = 11 : i64} {
  func.func @_bottleneck_kernel(%arg0: i32, %arg1: memref<4xf32, #tpu.memory_space<smem>>, %arg2: memref<1x16x256xf32, #tpu.memory_space<vmem>>, %arg3: memref<8x16xbf16, #tpu.memory_space<vmem>>, %arg4: memref<8x1xf32, #tpu.memory_space<vmem>>, %arg5: memref<8x72xbf16, #tpu.memory_space<vmem>>, %arg6: memref<8x1xf32, #tpu.memory_space<vmem>>, %arg7: memref<16x8xbf16, #tpu.memory_space<vmem>>, %arg8: memref<16x1xf32, #tpu.memory_space<vmem>>, %arg9: memref<1x16x256xf32, #tpu.memory_space<vmem>>) attributes {dimension_semantics = [#tpu.dimension_semantics<parallel>], iteration_bounds = array<i64: 2>, scalar_prefetch = 0 : i64, scratch_operands = 0 : i64, tpu.core_type = #tpu.core_type<tc>, window_params = [{transform_indices = @transform_0, window_bounds = array<i64: 4>}, {transform_indices = @transform_1, window_bounds = array<i64: 1, 16, 256>}, {pipeline_mode = #tpu.pipeline_mode<synchronous>, transform_indices = @transform_2, window_bounds = array<i64: 8, 16>}, {pipeline_mode = #tpu.pipeline_mode<synchronous>, transform_indices = @transform_3, window_bounds = array<i64: 8, 1>}, {pipeline_mode = #tpu.pipeline_mode<synchronous>, transform_indices = @transform_4, window_bounds = array<i64: 8, 72>}, {pipeline_mode = #tpu.pipeline_mode<synchronous>, transform_indices = @transform_5, window_bounds = array<i64: 8, 1>}, {pipeline_mode = #tpu.pipeline_mode<synchronous>, transform_indices = @transform_6, window_bounds = array<i64: 16, 8>}, {pipeline_mode = #tpu.pipeline_mode<synchronous>, transform_indices = @transform_7, window_bounds = array<i64: 16, 1>}, {transform_indices = @transform_8, window_bounds = array<i64: 1, 16, 256>}]} {
    %c0 = arith.constant 0 : index
    %c0_0 = arith.constant 0 : index
    %c0_1 = arith.constant 0 : index
    %0 = vector.load %arg2[%c0, %c0_0, %c0_1] : memref<1x16x256xf32, #tpu.memory_space<vmem>>, vector<1x16x256xf32>
    %1 = vector.shape_cast %0 : vector<1x16x256xf32> to vector<16x256xf32>
    %c0_2 = arith.constant 0 : index
    %2 = memref.load %arg1[%c0_2] : memref<4xf32, #tpu.memory_space<smem>>
    %c1 = arith.constant 1 : index
    %3 = memref.load %arg1[%c1] : memref<4xf32, #tpu.memory_space<smem>>
    %c2 = arith.constant 2 : index
    %4 = memref.load %arg1[%c2] : memref<4xf32, #tpu.memory_space<smem>>
    %c3 = arith.constant 3 : index
    %5 = memref.load %arg1[%c3] : memref<4xf32, #tpu.memory_space<smem>>
    %c0_3 = arith.constant 0 : index
    %c0_4 = arith.constant 0 : index
    %6 = vector.load %arg3[%c0_3, %c0_4] : memref<8x16xbf16, #tpu.memory_space<vmem>>, vector<8x16xbf16>
    %7 = arith.truncf %1 : vector<16x256xf32> to vector<16x256xbf16>
    %cst = arith.constant dense<0.000000e+00> : vector<8x256xf32>
    %8 = tpu.matmul %6, %7, %cst {dimension_numbers = #tpu.dot_dimension_numbers<[1], [0], [0], [1], [0, 0, 1, 1], [], []>} : vector<8x16xbf16>, vector<16x256xbf16>, vector<8x256xf32> -> vector<8x256xf32>
    %c0_5 = arith.constant 0 : index
    %c0_6 = arith.constant 0 : index
    %9 = vector.load %arg4[%c0_5, %c0_6] : memref<8x1xf32, #tpu.memory_space<vmem>>, vector<8x1xf32>
    %10 = vector.broadcast %9 : vector<8x1xf32> to vector<8x256xf32>
    %11 = arith.addf %8, %10 : vector<8x256xf32>
    %cst_7 = arith.constant 0.000000e+00 : f32
    %12 = vector.broadcast %cst_7 : f32 to vector<8x256xf32>
    %13 = arith.cmpf oge, %11, %12 : vector<8x256xf32>
    %14 = vector.broadcast %2 : f32 to vector<8x256xf32>
    %15 = arith.mulf %14, %11 : vector<8x256xf32>
    %16 = arith.select %13, %11, %15 : vector<8x256xi1>, vector<8x256xf32>
    %17 = tpu.iota {dimensions = array<i32: 1>} : vector<8x256xi32>
    %c16_i32 = arith.constant 16 : i32
    %c0_i32 = arith.constant 0 : i32
    %18 = arith.cmpi eq, %c16_i32, %c0_i32 : i32
    %c1_i32 = arith.constant 1 : i32
    %19 = arith.select %18, %c1_i32, %c16_i32 : i32
    %20 = vector.broadcast %19 : i32 to vector<8x256xi32>
    %21 = arith.remsi %17, %20 : vector<8x256xi32>
    %c0_i32_8 = arith.constant 0 : i32
    %22 = vector.broadcast %c0_i32_8 : i32 to vector<8x256xi32>
    %23 = arith.cmpi ne, %21, %22 : vector<8x256xi32>
    %c0_i32_9 = arith.constant 0 : i32
    %24 = vector.broadcast %c0_i32_9 : i32 to vector<8x256xi32>
    %25 = arith.cmpi slt, %21, %24 : vector<8x256xi32>
    %c0_i32_10 = arith.constant 0 : i32
    %26 = arith.cmpi slt, %19, %c0_i32_10 : i32
    %27 = vector.broadcast %26 : i1 to vector<8x256xi1>
    %28 = vector.broadcast %27 : vector<8x256xi1> to vector<8x256xi1>
    %29 = arith.xori %25, %28 : vector<8x256xi1>
    %30 = arith.andi %29, %23 : vector<8x256xi1>
    %31 = vector.broadcast %19 : i32 to vector<8x256xi32>
    %32 = arith.addi %21, %31 : vector<8x256xi32>
    %33 = arith.select %30, %32, %21 : vector<8x256xi1>, vector<8x256xi32>
    %c1_i32_11 = arith.constant 1 : i32
    %34 = vector.broadcast %c1_i32_11 : i32 to vector<8x256xi32>
    %35 = arith.cmpi sge, %33, %34 : vector<8x256xi32>
    %c14_i32 = arith.constant 14 : i32
    %36 = vector.broadcast %c14_i32 : i32 to vector<8x256xi32>
    %37 = arith.cmpi sle, %33, %36 : vector<8x256xi32>
    %c16_i32_12 = arith.constant 16 : i32
    %38 = vector.broadcast %c16_i32_12 : i32 to vector<8x256xi32>
    %39 = arith.cmpi sge, %17, %38 : vector<8x256xi32>
    %c240_i32 = arith.constant 240 : i32
    %40 = vector.broadcast %c240_i32 : i32 to vector<8x256xi32>
    %41 = arith.cmpi slt, %17, %40 : vector<8x256xi32>
    %c17_i32 = arith.constant 17 : i32
    %42 = tpu.dynamic_rotate %16 by %c17_i32 dim 1 : vector<8x256xf32>, i32 -> vector<8x256xf32>
    %43 = arith.andi %39, %35 : vector<8x256xi1>
    %cst_13 = arith.constant 0.000000e+00 : f32
    %44 = vector.broadcast %cst_13 : f32 to vector<8x256xf32>
    %45 = arith.select %43, %42, %44 : vector<8x256xi1>, vector<8x256xf32>
    %c16_i32_14 = arith.constant 16 : i32
    %46 = tpu.dynamic_rotate %16 by %c16_i32_14 dim 1 : vector<8x256xf32>, i32 -> vector<8x256xf32>
    %cst_15 = arith.constant 0.000000e+00 : f32
    %47 = vector.broadcast %cst_15 : f32 to vector<8x256xf32>
    %48 = arith.select %39, %46, %47 : vector<8x256xi1>, vector<8x256xf32>
    %c15_i32 = arith.constant 15 : i32
    %49 = tpu.dynamic_rotate %16 by %c15_i32 dim 1 : vector<8x256xf32>, i32 -> vector<8x256xf32>
    %50 = arith.andi %39, %37 : vector<8x256xi1>
    %cst_16 = arith.constant 0.000000e+00 : f32
    %51 = vector.broadcast %cst_16 : f32 to vector<8x256xf32>
    %52 = arith.select %50, %49, %51 : vector<8x256xi1>, vector<8x256xf32>
    %c1_i32_17 = arith.constant 1 : i32
    %53 = tpu.dynamic_rotate %16 by %c1_i32_17 dim 1 : vector<8x256xf32>, i32 -> vector<8x256xf32>
    %cst_18 = arith.constant 0.000000e+00 : f32
    %54 = vector.broadcast %cst_18 : f32 to vector<8x256xf32>
    %55 = arith.select %35, %53, %54 : vector<8x256xi1>, vector<8x256xf32>
    %c255_i32 = arith.constant 255 : i32
    %56 = tpu.dynamic_rotate %16 by %c255_i32 dim 1 : vector<8x256xf32>, i32 -> vector<8x256xf32>
    %cst_19 = arith.constant 0.000000e+00 : f32
    %57 = vector.broadcast %cst_19 : f32 to vector<8x256xf32>
    %58 = arith.select %37, %56, %57 : vector<8x256xi1>, vector<8x256xf32>
    %c241_i32 = arith.constant 241 : i32
    %59 = tpu.dynamic_rotate %16 by %c241_i32 dim 1 : vector<8x256xf32>, i32 -> vector<8x256xf32>
    %60 = arith.andi %41, %35 : vector<8x256xi1>
    %cst_20 = arith.constant 0.000000e+00 : f32
    %61 = vector.broadcast %cst_20 : f32 to vector<8x256xf32>
    %62 = arith.select %60, %59, %61 : vector<8x256xi1>, vector<8x256xf32>
    %c240_i32_21 = arith.constant 240 : i32
    %63 = tpu.dynamic_rotate %16 by %c240_i32_21 dim 1 : vector<8x256xf32>, i32 -> vector<8x256xf32>
    %cst_22 = arith.constant 0.000000e+00 : f32
    %64 = vector.broadcast %cst_22 : f32 to vector<8x256xf32>
    %65 = arith.select %41, %63, %64 : vector<8x256xi1>, vector<8x256xf32>
    %c239_i32 = arith.constant 239 : i32
    %66 = tpu.dynamic_rotate %16 by %c239_i32 dim 1 : vector<8x256xf32>, i32 -> vector<8x256xf32>
    %67 = arith.andi %41, %37 : vector<8x256xi1>
    %cst_23 = arith.constant 0.000000e+00 : f32
    %68 = vector.broadcast %cst_23 : f32 to vector<8x256xf32>
    %69 = arith.select %67, %66, %68 : vector<8x256xi1>, vector<8x256xf32>
    %70 = tpu.concatenate %45, %48, %52, %55, %16, %58, %62, %65, %69 in 0 : vector<8x256xf32>, vector<8x256xf32>, vector<8x256xf32>, vector<8x256xf32>, vector<8x256xf32>, vector<8x256xf32>, vector<8x256xf32>, vector<8x256xf32>, vector<8x256xf32> -> vector<72x256xf32>
    %c0_24 = arith.constant 0 : index
    %c0_25 = arith.constant 0 : index
    %71 = vector.load %arg5[%c0_24, %c0_25] : memref<8x72xbf16, #tpu.memory_space<vmem>>, vector<8x72xbf16>
    %72 = arith.truncf %70 : vector<72x256xf32> to vector<72x256xbf16>
    %cst_26 = arith.constant dense<0.000000e+00> : vector<8x256xf32>
    %73 = tpu.matmul %71, %72, %cst_26 {dimension_numbers = #tpu.dot_dimension_numbers<[1], [0], [0], [1], [0, 0, 1, 1], [], []>} : vector<8x72xbf16>, vector<72x256xbf16>, vector<8x256xf32> -> vector<8x256xf32>
    %c0_27 = arith.constant 0 : index
    %c0_28 = arith.constant 0 : index
    %74 = vector.load %arg6[%c0_27, %c0_28] : memref<8x1xf32, #tpu.memory_space<vmem>>, vector<8x1xf32>
    %75 = vector.broadcast %74 : vector<8x1xf32> to vector<8x256xf32>
    %76 = arith.addf %73, %75 : vector<8x256xf32>
    %cst_29 = arith.constant 0.000000e+00 : f32
    %77 = vector.broadcast %cst_29 : f32 to vector<8x256xf32>
    %78 = arith.cmpf oge, %76, %77 : vector<8x256xf32>
    %79 = vector.broadcast %3 : f32 to vector<8x256xf32>
    %80 = arith.mulf %79, %76 : vector<8x256xf32>
    %81 = arith.select %78, %76, %80 : vector<8x256xi1>, vector<8x256xf32>
    %c0_30 = arith.constant 0 : index
    %c0_31 = arith.constant 0 : index
    %82 = vector.load %arg7[%c0_30, %c0_31] : memref<16x8xbf16, #tpu.memory_space<vmem>>, vector<16x8xbf16>
    %83 = arith.truncf %81 : vector<8x256xf32> to vector<8x256xbf16>
    %cst_32 = arith.constant dense<0.000000e+00> : vector<16x256xf32>
    %84 = tpu.matmul %82, %83, %cst_32 {dimension_numbers = #tpu.dot_dimension_numbers<[1], [0], [0], [1], [0, 0, 1, 1], [], []>} : vector<16x8xbf16>, vector<8x256xbf16>, vector<16x256xf32> -> vector<16x256xf32>
    %c0_33 = arith.constant 0 : index
    %c0_34 = arith.constant 0 : index
    %85 = vector.load %arg8[%c0_33, %c0_34] : memref<16x1xf32, #tpu.memory_space<vmem>>, vector<16x1xf32>
    %86 = vector.broadcast %85 : vector<16x1xf32> to vector<16x256xf32>
    %87 = arith.addf %84, %86 : vector<16x256xf32>
    %cst_35 = arith.constant 0.000000e+00 : f32
    %88 = vector.broadcast %cst_35 : f32 to vector<16x256xf32>
    %89 = arith.cmpf oge, %87, %88 : vector<16x256xf32>
    %90 = vector.broadcast %4 : f32 to vector<16x256xf32>
    %91 = arith.mulf %90, %87 : vector<16x256xf32>
    %92 = arith.select %89, %87, %91 : vector<16x256xi1>, vector<16x256xf32>
    %93 = arith.addf %1, %92 : vector<16x256xf32>
    %cst_36 = arith.constant 0.000000e+00 : f32
    %94 = vector.broadcast %cst_36 : f32 to vector<16x256xf32>
    %95 = arith.cmpf oge, %93, %94 : vector<16x256xf32>
    %96 = vector.broadcast %5 : f32 to vector<16x256xf32>
    %97 = arith.mulf %96, %93 : vector<16x256xf32>
    %98 = arith.select %95, %93, %97 : vector<16x256xi1>, vector<16x256xf32>
    %c0_37 = arith.constant 0 : index
    %c0_38 = arith.constant 0 : index
    %c0_39 = arith.constant 0 : index
    %99 = vector.load %arg9[%c0_37, %c0_38, %c0_39] : memref<1x16x256xf32, #tpu.memory_space<vmem>>, vector<1x16x256xf32>
    %100 = vector.shape_cast %99 : vector<1x16x256xf32> to vector<16x256xf32>
    %101 = vector.shape_cast %98 : vector<16x256xf32> to vector<1x16x256xf32>
    tpu.vector_store %arg9[%c0_37, %c0_38, %c0_39], %101 {strides = array<i32>} : memref<1x16x256xf32, #tpu.memory_space<vmem>>, vector<1x16x256xf32>,
    return
  }
  func.func @transform_0(%arg0: i32) -> i32 {
    %c0_i32 = arith.constant 0 : i32
    %c0_i32_0 = arith.constant 0 : i32
    return %c0_i32 : i32
  }
  func.func @transform_1(%arg0: i32) -> (i32, i32, i32) {
    %c0_i32 = arith.constant 0 : i32
    %c0_i32_0 = arith.constant 0 : i32
    %c0_i32_1 = arith.constant 0 : i32
    return %arg0, %c0_i32, %c0_i32_0 : i32, i32, i32
  }
  func.func @transform_2(%arg0: i32) -> (i32, i32) {
    %c0_i32 = arith.constant 0 : i32
    %c0_i32_0 = arith.constant 0 : i32
    %c0_i32_1 = arith.constant 0 : i32
    return %c0_i32, %c0_i32_0 : i32, i32
  }
  func.func @transform_3(%arg0: i32) -> (i32, i32) {
    %c0_i32 = arith.constant 0 : i32
    %c0_i32_0 = arith.constant 0 : i32
    %c0_i32_1 = arith.constant 0 : i32
    return %c0_i32, %c0_i32_0 : i32, i32
  }
  func.func @transform_4(%arg0: i32) -> (i32, i32) {
    %c0_i32 = arith.constant 0 : i32
    %c0_i32_0 = arith.constant 0 : i32
    %c0_i32_1 = arith.constant 0 : i32
    return %c0_i32, %c0_i32_0 : i32, i32
  }
  func.func @transform_5(%arg0: i32) -> (i32, i32) {
    %c0_i32 = arith.constant 0 : i32
    %c0_i32_0 = arith.constant 0 : i32
    %c0_i32_1 = arith.constant 0 : i32
    return %c0_i32, %c0_i32_0 : i32, i32
  }
  func.func @transform_6(%arg0: i32) -> (i32, i32) {
    %c0_i32 = arith.constant 0 : i32
    %c0_i32_0 = arith.constant 0 : i32
    %c0_i32_1 = arith.constant 0 : i32
    return %c0_i32, %c0_i32_0 : i32, i32
  }
  func.func @transform_7(%arg0: i32) -> (i32, i32) {
    %c0_i32 = arith.constant 0 : i32
    %c0_i32_0 = arith.constant 0 : i32
    %c0_i32_1 = arith.constant 0 : i32
    return %c0_i32, %c0_i32_0 : i32, i32
  }
  func.func @transform_8(%arg0: i32) -> (i32, i32, i32) {
    %c0_i32 = arith.constant 0 : i32
    %c0_i32_0 = arith.constant 0 : i32
    %c0_i32_1 = arith.constant 0 : i32
    return %arg0, %c0_i32, %c0_i32_0 : i32, i32, i32
  }
}

</mosaic_0001>

<bundles_post_ra>
// kernel: tpu_custom_call.1
= control target key start
LH: loop header
LB: loop body
LE: loop exit
PB: predicated region body
PF: predicated region fallthrough
CT: control target
= control target key end

     0   :  { %s1501_s0 = inlined_call_operand.vmem [shape: f32[4], index: 0, kind: input, shape index: {}]   ;;  %s1502_s1 = inlined_call_operand.hbm [shape: f32[2,16,256], index: 1, kind: input, shape index: {}]   ;;  %s1503_s2 = inlined_call_operand.vmem [shape: bf16[8,16], index: 2, kind: input, shape index: {}]   ;;  %s1504_s3 = inlined_call_operand.vmem [shape: f32[8,1], index: 3, kind: input, shape index: {}]   ;;  %s1505_s4 = inlined_call_operand.vmem [shape: bf16[8,72], index: 4, kind: input, shape index: {}]   ;;  %s1506_s5 = inlined_call_operand.vmem [shape: f32[8,1], index: 5, kind: input, shape index: {}]   ;;  %s1507_s6 = inlined_call_operand.vmem [shape: bf16[16,8], index: 6, kind: input, shape index: {}]   ;;  %s1508_s7 = inlined_call_operand.vmem [shape: f32[16,1], index: 7, kind: input, shape index: {}]   ;;  %s1509_s8 = inlined_call_operand.hbm [shape: f32[2,16,256], index: 8, kind: output, shape index: {}]  }
   0x1   :  { %1513 = sst [smem:[#allocation12_spill]] %s1501_s0 }
   0x2   :  { %13 = vsyncpa [#allocation5], 0 }
   0x3   :  { %14 = vsyncpa [#allocation3], 0 }
   0x4   :  { %16 = vsyncpa [#allocation3 + $0x1], 0 }
   0x5   :  { %17 = vsyncpa [#allocation4], 0 }
   0x6   :  { %19 = vsyncpa [#allocation4 + $0x1], 0  ;;  %s1148_s27 = smov 0   ;;  %s1150_s28 = smov 0  }
   0x7   :  { %s1152_s29 = smov 0   ;;  %s1154_s30 = smov 0  }
   0x8 LB: > { %s1169_s9 = sadd.s32 4294967295, %s1085_s30   ;;  %s806_s10 = sadd.s32 4294967294, %s1085_s30   ;;  %s1085_s30 = sphi %s1154_s30, %s1549_s30   ;;  %s1081_s29 = sphi %s1152_s29, %s1548_s29   ;;  %s1077_s28 = sphi %s1150_s28, %s1547_s28   ;;  %s1073_s27 = sphi %s1148_s27, %s1546_s27  }
   0x9   : > { %s1173_s11 = sadd.s32 1, %s1085_s30   ;;  %s53_s12 = sadd.s32 1, %s1081_s29 }
   0xa   : > { %s50_s13 = ssub.s32 %s1085_s30, %s1173_s11  ;;  %p60_p0 = scmp.ne.s32.totalorder %s1081_s29, %s1077_s28 }
   0xb   : > { %p51_p1 = scmp.eq.s32.totalorder %s50_s13, 0  ;;  %p61_p2 = scmp.eq.s32.totalorder %s1085_s30, 0 }
   0xc   : > { %p66_p3 = scmp.ne.s32.totalorder %s1077_s28, %s1073_s27  ;;  %p1511_p4 = scmp.eq.s32.totalorder %s1169_s9, 0 }
   0xd   : > { %s1185_s14 = scalar_select %p51_p1, %s1081_s29, %s53_s12  }
   0xe   : > { %p1187_p5 = por %p61_p2, %p60_p0  ;;  %p1193_p6 = por %p1511_p4, %p66_p3 }
   0xf   : > { %1514 = sst [smem:[#allocation11_spill]] %s1185_s14  ;;  %p216_p7 = scmp.eq.s32.totalorder %s1169_s9, 1 }
  0x10   : > { %s1516_s16 = scalar_select %p1193_p6, 1, 0 }
  0x11   : > { %p222_p8 = scmp.eq.s32.totalorder %s806_s10, 1  ;;  %p807_p9 = scmp.ge.s32.totalorder %s1085_s30, 1 }
  0x12   : > { %p229_p10 = scmp.lt.s32.totalorder %s1085_s30, 3  ;;  %p1200_p11 = por %p216_p7, %p60_p0 }
  0x13   : > { %p1204_p12 = por %p222_p8, %p66_p3  ;;  %s1520_s0 = sld [smem:[#allocation12_spill]] }
  0x14   : > { %s1517_s17 = scalar_select %p1200_p11, 1, 0 }
  0x15   : > { %s1518_s18 = scalar_select %p1204_p12, 1, 0 }
  0x16   : > { %p1208_p13 = pnand %p807_p9, %p229_p10  ;;  %p878_p2 = scmp.lt.s32.totalorder %s1085_s30, 2 }
  0x17   : > { %s271_s24 = sand.u32 1, %s1081_s29  }
  0x18   : > { %p865_p1 = pneg %p1208_p13  ;;  %p1228_p3 = pnand %p878_p2, %p1187_p5 }
  0x19   : > { %s242_s22 = sshll.u32 %s1520_s0, 4  ;;  %s810_s26 = sshll.u32 %s271_s24, 5  ;;  %s243_s22 = int_to_ptr.vmem [resolvable:$true] %s242_s22 }
  0x1a   : > { %p1221_p7 = pnand %p865_p1, %p1511_p4  ;;  %s970_s10 = scalar_lea.vmem %s243_s22, 16 }
  0x1b   : > { %p971_p8 = scmp.ne.s32.totalorder %s243_s22, %s970_s10  ;;  %p978_p12 = scmp.lt.s32.totalorder %s243_s22, %s243_s22 }
  0x1c   : > { %p972_p9 = pneg %p1221_p7  ;;  %p979_p11 = scmp.lt.s32.totalorder %s970_s10, %s970_s10 }
  0x1e   : > { %p973_p10 = pnand %p972_p9, %p971_p8  ;;  %p980_p1 = por %p979_p11, %p978_p12 }
  0x20   : > { %p974_p0 = pneg %p973_p10 }
  0x22   : > { %p981_p4 = pnand %p980_p1, %p974_p0 }
  0x24   : > { %984 = shalt.err (!%p981_p4)
}
  0x25   : > { %s1087_s12 = smov [#allocation2]   ;;  %s855_s13 = sshll.u32 %s1085_s30, 9 }
  0x26   : > { %868 = dma.vmem_to_smem (!%p1221_p7), %s243_s22, 16, %s1087_s12, [#allocation5]  }
  0x27   : > { %s275_s15 = scalar_lea.vmem [#allocation6], %s810_s26  ;;  %s1240_s14 = scalar_lea.hbm %s1502_s1, %s855_s13 }
  0x28   : > { %s282_s20 = sshll.u32 %s275_s15, 4  ;;  %s1244_s10 = scalar_lea.sflag [#allocation3], %s271_s24  ;;  %s1242_s20 = int_to_ptr.vmem [resolvable:$true] %s282_s20 }
  0x29   : > { %s985_s23 = scalar_lea.hbm %s1240_s14, 512  ;;  %p987_p5 = pneg %p1228_p3 }
  0x2a   : > { %p986_p4 = scmp.ne.s32.totalorder %s1240_s14, %s985_s23  ;;  %s990_s26 = scalar_lea.hbm %s1502_s1, 1024 }
  0x2b   : > { %p991_p0 = scmp.lt.u32.totalorder %s1240_s14, %s1502_s1  ;;  %p992_p2 = scmp.lt.u32.totalorder %s990_s26, %s985_s23 }
  0x2c   : > { %p988_p11 = pnand %p987_p5, %p986_p4  ;;  %p994_p8 = scmp.lt.u32.totalorder %s985_s23, %s1240_s14 }
  0x2d   : > { %p993_p7 = por %p992_p2, %p991_p0 }
  0x2e   : > { %p989_p12 = pneg %p988_p11 }
  0x2f   : > { %p995_p9 = por %p994_p8, %p993_p7 }
  0x31   : > { %p996_p10 = pnand %p995_p9, %p989_p12 }
  0x33   : > { %999 = shalt.err (!%p996_p10)
}
  0x34   : > { %s1000_s24 = scalar_lea.vmem %s1242_s20, 512  ;;  %s1088_s15 = smov [#allocation6]  }
  0x35   : > { %p1001_p1 = scmp.ne.s32.totalorder %s1242_s20, %s1000_s24  ;;  %s1005_s21 = sshll.u32 %s1088_s15, 4  ;;  %s1006_s21 = int_to_ptr.vmem [resolvable:$false] %s1005_s21 }
  0x36   : > { %s1007_s22 = scalar_lea.vmem %s1006_s21, 1024  ;;  %p1008_p6 = scmp.lt.s32.totalorder %s1242_s20, %s1006_s21 }
  0x37   : > { %p1003_p4 = pnand %p1001_p1, %p987_p5  ;;  %p1009_p0 = scmp.lt.s32.totalorder %s1007_s22, %s1000_s24 }
  0x39   : > { %p1004_p11 = pneg %p1003_p4  ;;  %p1010_p2 = por %p1009_p0, %p1008_p6 }
  0x3b   : > { %p1011_p7 = pnand %p1010_p2, %p1004_p11 }
  0x3d   : > { %1014 = shalt.err (!%p1011_p7)
}
  0x3e   : > { %s1089_s23 = smov 256   ;;  %s1090_s0 = smov 16  }
  0x3f   : > { %872 = dma.hbm_to_vmem [thread:$0]  (!%p1228_p3), %s1240_s14, 512, %s1242_s20, %s1244_s10, %s1089_s23, %s1089_s23, %s1090_s0  }
  0x40   : > { %294 = sbr.rel (%p1208_p13) target bundleno = 909 (0x38d), region = 52  ;;  %p1523_p5 = scmp.eq.s32.totalorder (!%p1208_p13), %s1169_s9, 0 }
  0x47   : > { %1060 = dma.done.wait (%p1523_p5), [#allocation5], 16   ;;  %p1524_p12 = pmov %p1523_p5 }
  0x48   : > { %s1279_s26 = sand.u32 1, %s1077_s28   ;;  %p1525_p6 = scmp.ne.s32.totalorder %s1516_s16, 0 }
  0x49   : > { %1062 = vsyncadd (%p1524_p12), [#allocation5], 4294967280  ;;  %s815_s12 = sshll.u32 %s1279_s26, 5  ;;  %s301_s13 = scalar_lea.sflag [#allocation3], %s1279_s26 }
  0x4a   : > { %s304_s14 = scalar_lea.vmem [#allocation6], %s815_s12 }
  0x4b   : > { %1064 = dma.done.wait (%p1525_p6), %s301_s13, 512  }
  0x4c   : > { %1066 = vsyncadd (%p1525_p6), %s301_s13, 4294966784 }
  0x4d   : > { %309 = sfence }
  0x4e   : > { %v1289_v0 = vld [vmem:[%s304_s14 + $0x8] sm:$0xff]  ;;  %v1291_v1 = vld [vmem:[%s304_s14 + $0x18] sm:$0xff]  ;;  %v1293_v2 = vld [vmem:[%s304_s14] sm:$0xff]  ;;  %v1091_v5 = vmov 0   ;;  %vm356_vm0 = vcmask 130048   ;;  %s343_s10 = sld [smem:[#allocation2]]  ;;  %v408_v25 = vlaneseq }
  0x4f   : > { %v349_v3 = vpack.c.bf16 %v1291_v1, %v1289_v0  ;;  %v1297_v4 = vld [vmem:[%s304_s14 + $0x10] sm:$0xff]  ;;  %392 = vmatprep.mubr.bf16.mxu0 %v1091_v5  ;;  %927 = vset.pattern.permute.xlu0 %v1091_v5  ;;  %v350_v6 = vld [vmem:[%s1504_s3] sm:$0xff]  ;;  %s1092_s24 = smov 16   ;;  %s1093_s15 = smov 17   ;;  %v604_v24 = vld [vmem:[%s1508_s7 + $0x8] sm:$0xff]  ;;  %vm1100_vm11 = vmmov 1  }
  0x50   : > { %v348_v7 = vpack.c.bf16 %v1297_v4, %v1293_v2  ;;  %353 = vperm.xlu0 %927, %v350_v6   ;;  %583 = vmatprep.mubr.bf16.mxu1 %v1091_v5  ;;  %v347_v8 = vld [vmem:[%s1503_s2] sm:$0xf]  ;;  %s1094_s21 = smov 15   ;;  %s1095_s22 = smov 1   ;;  %v1323_v26 = vand.u32 127, %v408_v25 }
  0x51   : > { %360 = vmatprep.subr.bf16.mxu0 %v349_v3  ;;  %968 = vset.pattern.permute.xlu1 %v1091_v5  ;;  %s1096_s23 = smov 127   ;;  %s1097_s0 = smov 113   ;;  %v603_v22 = vld [vmem:[%s1508_s7] sm:$0xff] }
  0x52   : > { %361 = vmatpush1.bf16.msra.mxu0 %v348_v7  ;;  %s1098_s13 = smov 112   ;;  %s1099_s14 = smov 111   ;;  %v534_v23 = vld [vmem:[%s1506_s5] sm:$0xff]  ;;  %v1326_v27 = vadd.s32 128, %v1323_v26  ;;  %v415_v28 = vand.u32 15, %v1323_v26  ;;  %vm439_vm4 = vcmp.ge.s32.totalorder %v1323_v26, 16 }
  0x53   : > { %vm447_vm6 = vcmp.lt.s32.totalorder %v1323_v26, 17  ;;  %vm458_vm7 = vcmp.lt.s32.totalorder %v1323_v26, 16  ;;  %vm467_vm9 = vcmp.lt.s32.totalorder %v1323_v26, 15  ;;  %vm478_vm13 = vcmp.lt.s32.totalorder %v1323_v26, 1  ;;  %s819_s19 = sld [smem:[#allocation2 + $0x3]]  ;;  %s856_s25 = sshll.u32 %s1169_s9, 9 }
  0x54   : > { %v403_v11 = vstv %s343_s10  ;;  %v422_v29 = vand.u32 15, %v1326_v27  ;;  %vm1330_vm3 = vcmp.ge.s32.totalorder %v415_v28, 1  ;;  %vm1346_vm10 = vcmp.le.s32.totalorder %v415_v28, 14  ;;  %s337_s16 = scalar_lea.vmem [#allocation7], %s815_s12  ;;  %s1454_s9 = scalar_lea.hbm %s1509_s8, %s856_s25 }
  0x55   : > { %820 = vmatmul.mubr.msk.bf16.vlgmr.msra.gmra.mrb[0].mxu0 %vm356_vm0, %v347_v8  ;;  %vm450_vm8 = vmand %vm439_vm4, %vm1330_vm3  ;;  %s721_s20 = sshll.u32 %s337_s16, 4  ;;  %s708_s12 = scalar_lea.sflag [#allocation4], %s1279_s26  ;;  %s1456_s20 = int_to_ptr.vmem [resolvable:$true] %s721_s20 }
  0x56   : > { %662 = vmatprep.mubr.bf16.mxu0 %v1091_v5  ;;  %vm1335_vm5 = vcmp.ge.s32.totalorder %v422_v29, 1  ;;  %vm824_vm14 = vmpackc.low %vm439_vm4, %vm450_vm8  ;;  %vm1360_vm15 = vcmp.le.s32.totalorder %v422_v29, 14  ;;  %vm496_vm8 = vcmp.lt.s32.totalorder %v1323_v26, 113  ;;  %p1542_p3 = scmp.ne.s32.totalorder %s1517_s17, 0 }
  0x57   : > { %vm1353_vm12 = vmpackc.low %vm1100_vm11, %vm1335_vm5 }
  0x58   : > { %vm1368_vm0 = vmand %vm439_vm4, %vm1346_vm10 }
  0x59   : > { %vm830_vm4 = vmpackc.low %vm1330_vm3, %vm1368_vm0 }
  0xcf   : > { %v354_v9 = vpop.permute.xlu0 %353 }
 0x128   : > { %v394_v10 = vpop.f32.mrb[0].mxu0 }
 0x129   : > { %v395_v12 = vadd.f32 %v394_v10, %v354_v9  ;;  %v396_v13 = vpop.f32.mrb[1].mxu0 }
 0x12a   : > { %v397_v14 = vadd.f32 %v396_v13, %v354_v9  ;;  %v398_v15 = vpop.f32.mrb[2].mxu0 }
 0x12b   : > { %vm401_vm1 = vcmp.ge.f32.partialorder %v395_v12, 0.0  ;;  %v404_v16 = vmul.f32 %v403_v11, %v395_v12  ;;  %v399_v17 = vpop.f32.mrb[3].mxu0 }
 0x12c   : > { %vm402_vm2 = vcmp.ge.f32.partialorder %v397_v14, 0.0  ;;  %v405_v18 = vmul.f32 %v403_v11, %v397_v14 }
 0x12d   : > { %v1307_v19 = vsel %vm401_vm1, %v395_v12, %v404_v16  ;;  %vm827_vm1 = vmpackc.low %vm1335_vm5, %vm1360_vm15 }
 0x12e   : > { %v1309_v20 = vsel %vm402_vm2, %v397_v14, %v405_v18  ;;  %vm487_vm2 = vcmp.lt.s32.totalorder %v1323_v26, 127 }
 0x12f   : > { %v933_v21 = vpack.i.bf16 %v1309_v20, %v1307_v19 }
 0x131   : > { %934 = vrot.lane.b32.xlu1 %v933_v21, %s1092_s24  ;;  %929 = vrot.lane.b32.xlu0 %v933_v21, %s1093_s15 }
 0x135   : > { %939 = vrot.lane.b32.xlu1 %v933_v21, %s1094_s21  ;;  %944 = vrot.lane.b32.xlu0 %v933_v21, %s1095_s22  ;;  %s1015_s21 = scalar_lea.vmem %s1456_s20, 512  ;;  %s1101_s22 = smov [#allocation7]  }
 0x136   : > { %p1016_p13 = scmp.ne.s32.totalorder %s1456_s20, %s1015_s21 }
 0x138   : > { %p1017_p8 = pnand %p1016_p13, %p1542_p3 }
 0x139   : > { %949 = vrot.lane.b32.xlu1 %v933_v21, %s1096_s23  ;;  %954 = vrot.lane.b32.xlu0 %v933_v21, %s1097_s0  ;;  %s817_s23 = sld [smem:[#allocation2 + $0x1]] }
 0x13a   : > { %p1018_p9 = pneg %p1017_p8 }
 0x13d   : > { %959 = vrot.lane.b32.xlu1 %v933_v21, %s1098_s13  ;;  %964 = vrot.lane.b32.xlu0 %v933_v21, %s1099_s14  ;;  %s818_s14 = sld [smem:[#allocation2 + $0x2]] }
 0x141   : > { %607 = vperm.xlu0 %927, %v603_v22   ;;  %537 = vperm.xlu1 %968, %v534_v23  }
 0x145   : > { %612 = vperm.xlu1 %968, %v604_v24  }
 0x1a3   : > { %v935_v31 = vpop.permute.xlu1 %934  ;;  %v930_v32 = vpop.permute.xlu0 %929 }
 0x1a4   : > { %v937_v34 = vunpack.i.h.bf16 %v935_v31  ;;  %v936_v35 = vunpack.i.l.bf16 %v935_v31  ;;  %v932_v36 = vunpack.i.h.bf16 %v930_v32  ;;  %v931_v37 = vunpack.i.l.bf16 %v930_v32 }
 0x1a6   : > { %v448_v39 = vsel %vm447_vm6, %v931_v37, %v932_v36  ;;  %v459_v40 = vsel %vm458_vm7, %v936_v35, %v937_v34  ;;  %v449_v42 = vsel %vm447_vm6, %v932_v36, %v931_v37  ;;  %v460_v43 = vsel %vm458_vm7, %v937_v34, %v936_v35  ;;  %vm1391_vm7 = vmpackc.low %vm1360_vm15, %vm1100_vm11 }
 0x1a7   : > { %v940_v44 = vpop.permute.xlu1 %939  ;;  %v945_v45 = vpop.permute.xlu0 %944  ;;  %v822_v46 = vpack.c.bf16 %v459_v40, %v448_v39  ;;  %v825_v47 = vpack.c.bf16 %v460_v43, %v449_v42  ;;  %vm442_vm6 = vcmp.lt.s32.totalorder %v1326_v27, 240  ;;  %v523_v27 = vld [vmem:[%s1505_s4] sm:$0xf]  ;;  %v594_v34 = vstv %s817_s23  ;;  %s1019_s23 = sshll.u32 %s1101_s22, 4  ;;  %s1020_s23 = int_to_ptr.vmem [resolvable:$false] %s1019_s23 }
 0x1a8   : > { %v942_v49 = vunpack.i.h.bf16 %v940_v44  ;;  %v941_v50 = vunpack.i.l.bf16 %v940_v44  ;;  %v947_v51 = vunpack.i.h.bf16 %v945_v45  ;;  %v946_v52 = vunpack.i.l.bf16 %v945_v45  ;;  %vm520_vm0 = vmand %vm442_vm6, %vm1360_vm15  ;;  %s1021_s0 = scalar_lea.vmem %s1020_s23, 1024  ;;  %p1022_p10 = scmp.lt.s32.totalorder %s1456_s20, %s1020_s23 }
 0x1a9   : > { %823 = vmatprep.subr.msk.bf16.mxu1 %vm1353_vm12, %v822_v46  ;;  %vm507_vm12 = vcmp.lt.s32.totalorder %v1323_v26, 112  ;;  %vm842_vm15 = vmpackc.low %vm1100_vm11, %vm1330_vm3  ;;  %p1023_p1 = scmp.lt.s32.totalorder %s1021_s0, %s1015_s21 }
 0x1aa   : > { %v468_v54 = vsel %vm467_vm9, %v941_v50, %v942_v49  ;;  %v469_v55 = vsel %vm467_vm9, %v942_v49, %v941_v50  ;;  %v479_v56 = vsel %vm478_vm13, %v946_v52, %v947_v51  ;;  %v480_v57 = vsel %vm478_vm13, %v947_v51, %v946_v52  ;;  %826 = vmatpush1.bf16.msk.msra.mxu1 %vm824_vm14, %v825_v47  ;;  %vm1399_vm9 = vmpackc.low %vm1346_vm10, %vm1100_vm11  ;;  %v969_v47 = vld [vmem:[%s1507_s6] sm:$0xff]  }
 0x1ab   : > { %v828_v58 = vpack.c.bf16 %v479_v56, %v468_v54  ;;  %v831_v59 = vpack.c.bf16 %v480_v57, %v469_v55  ;;  %v950_v60 = vpop.permute.xlu1 %949  ;;  %v955_v61 = vpop.permute.xlu0 %954  ;;  %vm516_vm13 = vcmp.lt.s32.totalorder %v1323_v26, 111  ;;  %vm500_vm14 = vmand %vm442_vm6, %vm1335_vm5  ;;  %vm620_vm11 = vcmask 64512   ;;  %p1024_p4 = por %p1023_p1, %p1022_p10 }
 0x1ac   : > { %v952_v62 = vunpack.i.h.bf16 %v950_v60  ;;  %v951_v63 = vunpack.i.l.bf16 %v950_v60  ;;  %v957_v3 = vunpack.i.h.bf16 %v955_v61  ;;  %v956_v5 = vunpack.i.l.bf16 %v955_v61  ;;  %vm839_vm5 = vmpackc.low %vm442_vm6, %vm500_vm14 }
 0x1ad   : > { %829 = vmatprep.subr.msk.bf16.mxu1 %vm827_vm1, %v828_v58  ;;  %vm544_vm1 = vcmask 1043456   ;;  %v677_v50 = vstv %s818_s14  ;;  %p1025_p11 = pnand %p1024_p4, %p1018_p9 }
 0x1ae   : > { %v488_v7 = vsel %vm487_vm2, %v951_v63, %v952_v62  ;;  %v489_v8 = vsel %vm487_vm2, %v952_v62, %v951_v63  ;;  %832 = vmatpush1.bf16.msk.msra.mxu1 %vm830_vm4, %v831_v59  ;;  %v497_v18 = vsel %vm496_vm8, %v956_v5, %v957_v3  ;;  %vm540_vm2 = vcmask 588800  }
 0x1af   : > { %v834_v10 = vpack.c.bf16 %v489_v8, %v1309_v20  ;;  %v837_v11 = vpack.c.bf16 %v488_v7, %v1307_v19  ;;  %v960_v12 = vpop.permute.xlu1 %959  ;;  %v965_v13 = vpop.permute.xlu0 %964  ;;  %v498_v19 = vsel %vm496_vm8, %v957_v3, %v956_v5  ;;  %v694_v62 = vstv %s819_s19 }
 0x1b0   : > { %v962_v14 = vunpack.i.h.bf16 %v960_v12  ;;  %v961_v15 = vunpack.i.l.bf16 %v960_v12  ;;  %v967_v16 = vunpack.i.h.bf16 %v965_v13  ;;  %v966_v17 = vunpack.i.l.bf16 %v965_v13 }
 0x1b1   : > { %835 = vmatprep.subr.msk.bf16.mxu1 %vm1391_vm7, %v834_v10 }
 0x1b2   : > { %v508_v20 = vsel %vm507_vm12, %v961_v15, %v962_v14  ;;  %v509_v21 = vsel %vm507_vm12, %v962_v14, %v961_v15  ;;  %v518_v22 = vsel %vm516_vm13, %v967_v16, %v966_v17  ;;  %838 = vmatpush1.bf16.msk.msra.mxu1 %vm1399_vm9, %v837_v11  ;;  %v517_v23 = vsel %vm516_vm13, %v966_v17, %v967_v16 }
 0x1b3   : > { %v840_v24 = vpack.c.bf16 %v509_v21, %v498_v19  ;;  %v843_v25 = vpack.c.bf16 %v508_v20, %v497_v18  ;;  %v522_v28 = vsel %vm520_vm0, %v518_v22, 0.0  ;;  %v521_v29 = vsel %vm1346_vm10, %v517_v23, 0.0 }
 0x1b4   : > { %v533_v31 = vpack.c.bf16 %v522_v28, %v522_v28  ;;  %v532_v32 = vpack.c.bf16 %v521_v29, %v521_v29 }
 0x1b5   : > { %841 = vmatprep.subr.msk.bf16.mxu1 %vm839_vm5, %v840_v24 }
 0x1b6   : > { %844 = vmatpush1.bf16.msk.msra.mxu1 %vm842_vm15, %v843_v25  ;;  %v546_v26 = vsel %vm544_vm1, %v532_v32, 0 }
 0x1b7   : > { %845 = vmatprep.subr.msk.bf16.mxu1 %vm544_vm1, %v533_v31 }
 0x1ba   : > { %560 = vmatpush1.bf16.msra.mxu1 %v546_v26 }
 0x1bd   : > { %846 = vmatmul.mubr.msk.bf16.vlgmr.msra.gmra.mrb[0].mxu1 %vm540_vm2, %v523_v27 }
 0x1c0   : > { %v538_v30 = vpop.permute.xlu1 %537  ;;  %v608_v48 = vpop.permute.xlu0 %607 }
 0x1c4   : > { %v613_v53 = vpop.permute.xlu1 %612 }
 0x290   : > { %v585_v33 = vpop.f32.mrb[0].mxu1 }
 0x291   : > { %v586_v35 = vadd.f32 %v585_v33, %v538_v30  ;;  %v587_v36 = vpop.f32.mrb[1].mxu1 }
 0x292   : > { %v588_v37 = vadd.f32 %v587_v36, %v538_v30  ;;  %v589_v38 = vpop.f32.mrb[2].mxu1 }
 0x293   : > { %vm592_vm3 = vcmp.ge.f32.partialorder %v586_v35, 0.0  ;;  %v595_v39 = vmul.f32 %v594_v34, %v586_v35  ;;  %v590_v40 = vpop.f32.mrb[3].mxu1 }
 0x294   : > { %vm593_vm10 = vcmp.ge.f32.partialorder %v588_v37, 0.0  ;;  %v596_v41 = vmul.f32 %v594_v34, %v588_v37 }
 0x295   : > { %v597_v42 = vsel %vm592_vm3, %v586_v35, %v595_v39 }
 0x296   : > { %v601_v43 = vpack.c.bf16 %v597_v42, %v597_v42  ;;  %v598_v44 = vsel %vm593_vm10, %v588_v37, %v596_v41 }
 0x297   : > { %v602_v45 = vpack.c.bf16 %v598_v44, %v598_v44 }
 0x298   : > { %v625_v46 = vsel %vm544_vm1, %v601_v43, 0 }
 0x299   : > { %848 = vmatprep.subr.msk.bf16.mxu0 %vm544_vm1, %v602_v45 }
 0x29a   : > { %631 = vmatpush1.bf16.msra.mxu0 %v625_v46 }
 0x29d   : > { %849 = vmatmul.mubr.msk.bf16.vlgmr.msra.gmra.mrb[4].mxu0 %vm620_vm11, %v969_v47 }
 0x370   : > { %v664_v49 = vpop.f32.mrb[4].mxu0 }
 0x371   : > { %v665_v51 = vadd.f32 %v664_v49, %v608_v48  ;;  %v666_v52 = vpop.f32.mrb[5].mxu0 }
 0x372   : > { %v667_v54 = vadd.f32 %v666_v52, %v608_v48  ;;  %v668_v55 = vpop.f32.mrb[6].mxu0 }
 0x373   : > { %vm673_vm4 = vcmp.ge.f32.partialorder %v665_v51, 0.0  ;;  %v678_v56 = vmul.f32 %v677_v50, %v665_v51  ;;  %v669_v57 = vadd.f32 %v668_v55, %v613_v53  ;;  %v670_v58 = vpop.f32.mrb[7].mxu0 }
 0x374   : > { %vm674_vm6 = vcmp.ge.f32.partialorder %v667_v54, 0.0  ;;  %v679_v59 = vmul.f32 %v677_v50, %v667_v54  ;;  %v671_v60 = vadd.f32 %v670_v58, %v613_v53 }
 0x375   : > { %v682_v61 = vsel %vm673_vm4, %v665_v51, %v678_v56  ;;  %vm675_vm7 = vcmp.ge.f32.partialorder %v669_v57, 0.0  ;;  %v680_v63 = vmul.f32 %v677_v50, %v669_v57 }
 0x376   : > { %v686_v3 = vadd.f32 %v682_v61, %v1293_v2  ;;  %v683_v5 = vsel %vm674_vm6, %v667_v54, %v679_v59  ;;  %vm676_vm8 = vcmp.ge.f32.partialorder %v671_v60, 0.0  ;;  %v681_v6 = vmul.f32 %v677_v50, %v671_v60 }
 0x377   : > { %v687_v7 = vadd.f32 %v683_v5, %v1289_v0  ;;  %v684_v8 = vsel %vm675_vm7, %v669_v57, %v680_v63 }
 0x378   : > { %vm690_vm9 = vcmp.ge.f32.partialorder %v686_v3, 0.0  ;;  %v695_v9 = vmul.f32 %v694_v62, %v686_v3  ;;  %v688_v10 = vadd.f32 %v684_v8, %v1297_v4  ;;  %v685_v11 = vsel %vm676_vm8, %v671_v60, %v681_v6 }
 0x379   : > { %vm691_vm12 = vcmp.ge.f32.partialorder %v687_v7, 0.0  ;;  %v696_v12 = vmul.f32 %v694_v62, %v687_v7  ;;  %v689_v13 = vadd.f32 %v685_v11, %v1291_v1 }
 0x37a   : > { %v699_v2 = vsel %vm690_vm9, %v686_v3, %v695_v9  ;;  %vm692_vm13 = vcmp.ge.f32.partialorder %v688_v10, 0.0  ;;  %v697_v14 = vmul.f32 %v694_v62, %v688_v10 }
 0x37b   : > { %703 = vst [vmem:[%s337_s16] sm:$0xff] %v699_v2  ;;  %v700_v0 = vsel %vm691_vm12, %v687_v7, %v696_v12  ;;  %vm693_vm14 = vcmp.ge.f32.partialorder %v689_v13, 0.0  ;;  %v698_v15 = vmul.f32 %v694_v62, %v689_v13 }
 0x37c   : > { %704 = vst [vmem:[%s337_s16 + $0x8] sm:$0xff] %v700_v0  ;;  %v701_v4 = vsel %vm692_vm13, %v688_v10, %v697_v14 }
 0x37d   : > { %705 = vst [vmem:[%s337_s16 + $0x10] sm:$0xff] %v701_v4  ;;  %v702_v1 = vsel %vm693_vm14, %v689_v13, %v698_v15 }
 0x37e   : > { %706 = vst [vmem:[%s337_s16 + $0x18] sm:$0xff] %v702_v1 }
 0x37f   : > { %1028 = shalt.err (!%p1025_p11)
}
 0x380   : > { %s1029_s13 = scalar_lea.hbm %s1454_s9, 512  ;;  %s1033_s25 = scalar_lea.hbm %s1509_s8, 1024 }
 0x381   : > { %p1030_p0 = scmp.ne.s32.totalorder %s1454_s9, %s1029_s13  ;;  %p1034_p5 = scmp.lt.u32.totalorder %s1454_s9, %s1509_s8 }
 0x382   : > { %p1035_p12 = scmp.lt.u32.totalorder %s1033_s25, %s1029_s13  ;;  %p1037_p13 = scmp.lt.u32.totalorder %s1029_s13, %s1454_s9 }
 0x383   : > { %p1031_p2 = pnand %p1030_p0, %p1542_p3 }
 0x384   : > { %p1036_p6 = por %p1035_p12, %p1034_p5 }
 0x385   : > { %p1032_p7 = pneg %p1031_p2 }
 0x386   : > { %p1038_p8 = por %p1037_p13, %p1036_p6 }
 0x388   : > { %p1039_p9 = pnand %p1038_p8, %p1032_p7 }
 0x38a   : > { %1042 = shalt.err (!%p1039_p9)
}
 0x38b   : > { %s1102_s15 = smov 256  }
 0x38c   : > { %863 = dma.vmem_to_hbm [thread:$0]  (%p1542_p3), %s1456_s20, 512, %s1454_s9, %s708_s12, %s1102_s15, %s1102_s15, %s1092_s24  }
 0x38d PF: > { %s736_s21 = sand.u32 1, %s1073_s27   ;;  %p1543_p10 = scmp.ne.s32.totalorder %s1518_s18, 0 }
 0x38e   : > { %p1544_p1 = scmp.ge.s32.totalorder %s1085_s30, 2  ;;  %s737_s22 = scalar_lea.sflag [#allocation4], %s736_s21 }
 0x390   : > { %p874_p4 = pnand %p1544_p1, %p1543_p10 }
 0x392   : > { %1068 = dma.done.wait (!%p874_p4), %s737_s22, 512  }
 0x393   : > { %1070 = vsyncadd (!%p874_p4), %s737_s22, 4294966784  ;;  %s1545_s17 = sld [smem:[#allocation11_spill]]  ;;  %p22_p11 = scmp.ge.s32.totalorder %s1173_s11, 4  }
 0x394   : > { %s1546_s27 = smov %s1077_s28  ;;  %s1547_s28 = smov %s1081_s29 }
 0x395   : > { %s1549_s30 = smov %s1173_s11  ;;  %24 = sbr.rel (!%p22_p11) target bundleno = 8 (0x8), region = 102 }
 0x399   : > { %s1548_s29 = smov %s1545_s17 }
 0x39c   :  { %742 = vsyncpa [#allocation3], 1 }
 0x39d   :  { %744 = vsyncpa [#allocation3 + $0x1], 1 }
 0x39e   :  { %745 = vsyncpa [#allocation4], 1 }
 0x39f   :  { %747 = vsyncpa [#allocation4 + $0x1], 1 }
 0x3a0   :  { %748 = vsyncpa [#allocation5], 1 }
 0x3a1   :  { %750 = vsyncpa [#allocation5 + $0x1], 1 }

</bundles_post_ra>
